<compile_context>
chip_gen: v7x
topology: tpu7x:2x2x1
jax: 0.10.0
libtpu: 0.0.40
codegen_flags: <defaults>
</compile_context>

<pallas_src>
import functools
import numpy as np
import jax
import jax.numpy as jnp
from jax.experimental import pallas as pl
from jax.experimental.pallas import tpu as pltpu


# ---------------------------------------------------------------------------
# Deterministic stencil weights (plain Python floats, baked into the kernel)
# ---------------------------------------------------------------------------
def _gauss3x3(sigma=1.0):
    ax = np.arange(-1, 2, dtype=np.float64)
    g = np.exp(-(ax[:, None] ** 2 + ax[None, :] ** 2) / (2.0 * sigma ** 2))
    g /= g.sum()
    return g


# Separable 1-D Gaussian taps [a, b, a] (a + b + a == 1); outer product equals
# the normalized 2-D Gaussian used by the reference stencil.
_E = float(np.exp(-0.5))
_B1D = 1.0 / (1.0 + 2.0 * _E)
_A1D = _E / (1.0 + 2.0 * _E)


# ---------------------------------------------------------------------------
# Fused kernel body: one batch image per grid step, everything in vregs/VMEM.
# ---------------------------------------------------------------------------
def _fused_stmd_kernel(x_ref, o_ref, *, a, b, H, W):
    # Block is (1, Hp, Wp); Hp/Wp are the padded (8/128-aligned) plane dims.
    Hp = x_ref.shape[1]
    Wp = x_ref.shape[2]
    a = jnp.float32(a)
    b = jnp.float32(b)

    # Neighbor-validity masks at the *logical* image boundary, hoisted so
    # every stencil reuses the same four masks (also kill the roll wrap-around
    # columns/rows).  Built once per grid step on the VPU.
    row = jax.lax.broadcasted_iota(jnp.int32, (Hp, Wp), 0)
    col = jax.lax.broadcasted_iota(jnp.int32, (Hp, Wp), 1)
    m_n = row > 0          # north neighbor (i-1) exists
    m_s = row < H - 1      # south neighbor (i+1) exists (zero-pad past H)
    m_w = col > 0          # west  neighbor (j-1) exists
    m_e = col < W - 1      # east  neighbor (j+1) exists (zero-pad past W)

    # In-register neighbor fetches: XLU rotate + VPU select, no VMEM scratch.
    def shift_n(v):   # v[i-1, j]
        return jnp.where(m_n, pltpu.roll(v, 1, axis=0), 0.0)

    def shift_s(v):   # v[i+1, j]
        return jnp.where(m_s, pltpu.roll(v, Hp - 1, axis=0), 0.0)

    def shift_w(v):   # v[i, j-1]
        return jnp.where(m_w, pltpu.roll(v, 1, axis=1), 0.0)

    def shift_e(v):   # v[i, j+1]
        return jnp.where(m_e, pltpu.roll(v, Wp - 1, axis=1), 0.0)

    def blur(v):
        # Separable normalized 3x3 Gaussian with zero padding.
        r = a * (shift_w(v) + shift_e(v)) + b * v
        return a * (shift_n(r) + shift_s(r)) + b * r

    def box(v):
        # Separable 3x3 box sum with zero padding.
        r = shift_w(v) + v + shift_e(v)
        return shift_n(r) + r + shift_s(r)

    img = x_ref[0]                               # (Hp, Wp)

    # Retina: spatial Gaussian blur
    retina = blur(img)
    # Lamina: LMC band-pass (delta - gaussian)  ==  x - blur(x)
    lamina = retina - blur(retina)
    # Medulla: ON/OFF half-wave rectification + delayed channels
    on = jnp.maximum(lamina, 0.0)                # Tm3: direct ON
    off = jnp.maximum(-lamina, 0.0)              # Tm2: direct OFF
    mi1 = blur(on)                               # Mi1: delayed ON (spatial surrogate)
    tm1 = blur(off)                              # Tm1: delayed OFF (spatial surrogate)
    # Lobula: STMD correlation + lateral inhibition + ReLU
    corr = on * tm1 + mi1 * off
    inhib = 1.125 * corr - 0.125 * box(corr)     # center 1.0, neighbors -0.125
    o_ref[0] = jnp.maximum(inhib, 0.0)


# ---------------------------------------------------------------------------
# Generation-aware VMEM limit (clamped to the chip's physical VMEM)
# ---------------------------------------------------------------------------
def _vmem_limit_bytes():
    cap = 64 * 1024 * 1024           # conservative default (v7x per-core VMEM)
    try:
        info = pltpu.get_tpu_info()
        cap = int(getattr(info, "vmem_capacity_bytes", cap)) or cap
    except Exception:
        pass
    return int(cap * 3 // 4)         # leave ~25% headroom


# ---------------------------------------------------------------------------
# pallas_call wrapper (grid over batch; lane-dense padded plane per grid step)
# ---------------------------------------------------------------------------
def stmd_forward_fused(img):
    """img: (B, H, W) float32 -> lobula output (B, H, W) float32."""
    B, H, W = img.shape
    Hp = -(-H // 8) * 8          # sublane-aligned
    Wp = -(-W // 128) * 128      # lane-dense stores
    x = img
    if (Hp, Wp) != (H, W):
        x = jnp.pad(img, ((0, 0), (0, Hp - H), (0, Wp - W)))

    kern = functools.partial(_fused_stmd_kernel, a=_A1D, b=_B1D, H=H, W=W)
    out = pl.pallas_call(
        kern,
        out_shape=jax.ShapeDtypeStruct((B, Hp, Wp), jnp.float32),
        grid=(B,),
        in_specs=[pl.BlockSpec((1, Hp, Wp), lambda bi: (bi, 0, 0))],
        out_specs=pl.BlockSpec((1, Hp, Wp), lambda bi: (bi, 0, 0)),
        compiler_params=pltpu.CompilerParams(
            dimension_semantics=("parallel",),
            vmem_limit_bytes=_vmem_limit_bytes(),
        ),
    )(x)

    if (Hp, Wp) != (H, W):
        out = out[:, :H, :W]
    return out


# ---------------------------------------------------------------------------
# Full NewModel forward (NCHW in / NCHW out, like the PyTorch module)
# ---------------------------------------------------------------------------
@jax.jit
def new_model_forward(ipt):
    """ipt: (B, 1, H, W) float32 NCHW. Returns lobulaOpt (B, 1, H, W) float32."""
    img = ipt[:, 0, :, :].astype(jnp.float32)     # (B, H, W)
    lobula = stmd_forward_fused(img)
    return lobula[:, None, :, :]


# ---------------------------------------------------------------------------
# Pure-numpy reference (direct 2D stencils) for a correctness check
# ---------------------------------------------------------------------------
def _ref_forward(x_np):
    g = _gauss3x3(1.0)
    lmc = -g.copy()
    lmc[1, 1] += 1.0
    inh = np.full((3, 3), -0.125)
    inh[1, 1] = 1.0

    def conv(img, w):
        H, W = img.shape
        p = np.zeros((H + 2, W + 2))
        p[1:H + 1, 1:W + 1] = img
        out = np.zeros((H, W))
        for di in range(3):
            for dj in range(3):
                out += w[di, dj] * p[di:di + H, dj:dj + W]
        return out

    outs = []
    for bi in range(x_np.shape[0]):
        img = x_np[bi, 0].astype(np.float64)
        retina = conv(img, g)
        lamina = conv(retina, lmc)
        on = np.maximum(lamina, 0.0)
        off = np.maximum(-lamina, 0.0)
        mi1 = conv(on, g)
        tm1 = conv(off, g)
        corr = on * tm1 + mi1 * off
        outs.append(np.maximum(conv(corr, inh), 0.0))
    return np.stack(outs)[:, None, :, :]


if __name__ == "__main__":
    key = jax.random.PRNGKey(0)
    x = jax.random.uniform(key, (2, 1, 16, 16), dtype=jnp.float32)

    out = new_model_forward(x)
    jax.block_until_ready(out)

    assert out.shape == (2, 1, 16, 16) and out.dtype == jnp.float32
    assert bool(jnp.all(jnp.isfinite(out)))

    ref = _ref_forward(np.asarray(x))
    assert np.allclose(np.asarray(out), ref, atol=1e-4, rtol=1e-4)

    print("KERNEL_OK")
</pallas_src>

<mosaic_0001>
module attributes {stable_mosaic.version = 11 : i64} {
  func.func @_fused_stmd_kernel(%arg0: i32, %arg1: memref<1x16x128xf32, #tpu.memory_space<vmem>>, %arg2: memref<1x16x128xf32, #tpu.memory_space<vmem>>) attributes {dimension_semantics = [#tpu.dimension_semantics<parallel>], iteration_bounds = array<i64: 2>, scalar_prefetch = 0 : i64, scratch_operands = 0 : i64, tpu.core_type = #tpu.core_type<tc>, window_params = [{transform_indices = @transform_0, window_bounds = array<i64: 1, 16, 128>}, {transform_indices = @transform_1, window_bounds = array<i64: 1, 16, 128>}]} {
    %0 = tpu.iota {dimensions = array<i32: 0>} : vector<16x128xi32>
    %1 = tpu.iota {dimensions = array<i32: 1>} : vector<16x128xi32>
    %c0_i32 = arith.constant 0 : i32
    %2 = vector.broadcast %c0_i32 : i32 to vector<16x128xi32>
    %3 = arith.cmpi sgt, %0, %2 : vector<16x128xi32>
    %c15_i32 = arith.constant 15 : i32
    %4 = vector.broadcast %c15_i32 : i32 to vector<16x128xi32>
    %5 = arith.cmpi slt, %0, %4 : vector<16x128xi32>
    %c0_i32_0 = arith.constant 0 : i32
    %6 = vector.broadcast %c0_i32_0 : i32 to vector<16x128xi32>
    %7 = arith.cmpi sgt, %1, %6 : vector<16x128xi32>
    %c15_i32_1 = arith.constant 15 : i32
    %8 = vector.broadcast %c15_i32_1 : i32 to vector<16x128xi32>
    %9 = arith.cmpi slt, %1, %8 : vector<16x128xi32>
    %c0 = arith.constant 0 : index
    %c0_2 = arith.constant 0 : index
    %c0_3 = arith.constant 0 : index
    %10 = vector.load %arg1[%c0, %c0_2, %c0_3] : memref<1x16x128xf32, #tpu.memory_space<vmem>>, vector<1x16x128xf32>
    %11 = vector.shape_cast %10 : vector<1x16x128xf32> to vector<16x128xf32>
    %c1_i32 = arith.constant 1 : i32
    %12 = tpu.dynamic_rotate %11 by %c1_i32 dim 1 : vector<16x128xf32>, i32 -> vector<16x128xf32>
    %cst = arith.constant 0.000000e+00 : f32
    %13 = vector.broadcast %cst : f32 to vector<16x128xf32>
    %14 = arith.select %7, %12, %13 : vector<16x128xi1>, vector<16x128xf32>
    %c127_i32 = arith.constant 127 : i32
    %15 = tpu.dynamic_rotate %11 by %c127_i32 dim 1 : vector<16x128xf32>, i32 -> vector<16x128xf32>
    %cst_4 = arith.constant 0.000000e+00 : f32
    %16 = vector.broadcast %cst_4 : f32 to vector<16x128xf32>
    %17 = arith.select %9, %15, %16 : vector<16x128xi1>, vector<16x128xf32>
    %18 = arith.addf %14, %17 : vector<16x128xf32>
    %cst_5 = arith.constant 0.274068624 : f32
    %19 = vector.broadcast %cst_5 : f32 to vector<16x128xf32>
    %20 = arith.mulf %19, %18 : vector<16x128xf32>
    %cst_6 = arith.constant 0.451862752 : f32
    %21 = vector.broadcast %cst_6 : f32 to vector<16x128xf32>
    %22 = arith.mulf %21, %11 : vector<16x128xf32>
    %23 = arith.addf %20, %22 : vector<16x128xf32>
    %c1_i32_7 = arith.constant 1 : i32
    %24 = tpu.dynamic_rotate %23 by %c1_i32_7 dim 0 : vector<16x128xf32>, i32 -> vector<16x128xf32>
    %cst_8 = arith.constant 0.000000e+00 : f32
    %25 = vector.broadcast %cst_8 : f32 to vector<16x128xf32>
    %26 = arith.select %3, %24, %25 : vector<16x128xi1>, vector<16x128xf32>
    %c15_i32_9 = arith.constant 15 : i32
    %27 = tpu.dynamic_rotate %23 by %c15_i32_9 dim 0 : vector<16x128xf32>, i32 -> vector<16x128xf32>
    %cst_10 = arith.constant 0.000000e+00 : f32
    %28 = vector.broadcast %cst_10 : f32 to vector<16x128xf32>
    %29 = arith.select %5, %27, %28 : vector<16x128xi1>, vector<16x128xf32>
    %30 = arith.addf %26, %29 : vector<16x128xf32>
    %cst_11 = arith.constant 0.274068624 : f32
    %31 = vector.broadcast %cst_11 : f32 to vector<16x128xf32>
    %32 = arith.mulf %31, %30 : vector<16x128xf32>
    %cst_12 = arith.constant 0.451862752 : f32
    %33 = vector.broadcast %cst_12 : f32 to vector<16x128xf32>
    %34 = arith.mulf %33, %23 : vector<16x128xf32>
    %35 = arith.addf %32, %34 : vector<16x128xf32>
    %c1_i32_13 = arith.constant 1 : i32
    %36 = tpu.dynamic_rotate %35 by %c1_i32_13 dim 1 : vector<16x128xf32>, i32 -> vector<16x128xf32>
    %cst_14 = arith.constant 0.000000e+00 : f32
    %37 = vector.broadcast %cst_14 : f32 to vector<16x128xf32>
    %38 = arith.select %7, %36, %37 : vector<16x128xi1>, vector<16x128xf32>
    %c127_i32_15 = arith.constant 127 : i32
    %39 = tpu.dynamic_rotate %35 by %c127_i32_15 dim 1 : vector<16x128xf32>, i32 -> vector<16x128xf32>
    %cst_16 = arith.constant 0.000000e+00 : f32
    %40 = vector.broadcast %cst_16 : f32 to vector<16x128xf32>
    %41 = arith.select %9, %39, %40 : vector<16x128xi1>, vector<16x128xf32>
    %42 = arith.addf %38, %41 : vector<16x128xf32>
    %cst_17 = arith.constant 0.274068624 : f32
    %43 = vector.broadcast %cst_17 : f32 to vector<16x128xf32>
    %44 = arith.mulf %43, %42 : vector<16x128xf32>
    %cst_18 = arith.constant 0.451862752 : f32
    %45 = vector.broadcast %cst_18 : f32 to vector<16x128xf32>
    %46 = arith.mulf %45, %35 : vector<16x128xf32>
    %47 = arith.addf %44, %46 : vector<16x128xf32>
    %c1_i32_19 = arith.constant 1 : i32
    %48 = tpu.dynamic_rotate %47 by %c1_i32_19 dim 0 : vector<16x128xf32>, i32 -> vector<16x128xf32>
    %cst_20 = arith.constant 0.000000e+00 : f32
    %49 = vector.broadcast %cst_20 : f32 to vector<16x128xf32>
    %50 = arith.select %3, %48, %49 : vector<16x128xi1>, vector<16x128xf32>
    %c15_i32_21 = arith.constant 15 : i32
    %51 = tpu.dynamic_rotate %47 by %c15_i32_21 dim 0 : vector<16x128xf32>, i32 -> vector<16x128xf32>
    %cst_22 = arith.constant 0.000000e+00 : f32
    %52 = vector.broadcast %cst_22 : f32 to vector<16x128xf32>
    %53 = arith.select %5, %51, %52 : vector<16x128xi1>, vector<16x128xf32>
    %54 = arith.addf %50, %53 : vector<16x128xf32>
    %cst_23 = arith.constant 0.274068624 : f32
    %55 = vector.broadcast %cst_23 : f32 to vector<16x128xf32>
    %56 = arith.mulf %55, %54 : vector<16x128xf32>
    %cst_24 = arith.constant 0.451862752 : f32
    %57 = vector.broadcast %cst_24 : f32 to vector<16x128xf32>
    %58 = arith.mulf %57, %47 : vector<16x128xf32>
    %59 = arith.addf %56, %58 : vector<16x128xf32>
    %60 = arith.subf %35, %59 : vector<16x128xf32>
    %cst_25 = arith.constant 0.000000e+00 : f32
    %61 = vector.broadcast %cst_25 : f32 to vector<16x128xf32>
    %62 = arith.maximumf %60, %61 : vector<16x128xf32>
    %cst_26 = arith.constant 0.000000e+00 : f32
    %63 = vector.broadcast %cst_26 : f32 to vector<16x128xf32>
    %64 = arith.subf %63, %60 : vector<16x128xf32>
    %cst_27 = arith.constant 0.000000e+00 : f32
    %65 = vector.broadcast %cst_27 : f32 to vector<16x128xf32>
    %66 = arith.maximumf %64, %65 : vector<16x128xf32>
    %c1_i32_28 = arith.constant 1 : i32
    %67 = tpu.dynamic_rotate %62 by %c1_i32_28 dim 1 : vector<16x128xf32>, i32 -> vector<16x128xf32>
    %cst_29 = arith.constant 0.000000e+00 : f32
    %68 = vector.broadcast %cst_29 : f32 to vector<16x128xf32>
    %69 = arith.select %7, %67, %68 : vector<16x128xi1>, vector<16x128xf32>
    %c127_i32_30 = arith.constant 127 : i32
    %70 = tpu.dynamic_rotate %62 by %c127_i32_30 dim 1 : vector<16x128xf32>, i32 -> vector<16x128xf32>
    %cst_31 = arith.constant 0.000000e+00 : f32
    %71 = vector.broadcast %cst_31 : f32 to vector<16x128xf32>
    %72 = arith.select %9, %70, %71 : vector<16x128xi1>, vector<16x128xf32>
    %73 = arith.addf %69, %72 : vector<16x128xf32>
    %cst_32 = arith.constant 0.274068624 : f32
    %74 = vector.broadcast %cst_32 : f32 to vector<16x128xf32>
    %75 = arith.mulf %74, %73 : vector<16x128xf32>
    %cst_33 = arith.constant 0.451862752 : f32
    %76 = vector.broadcast %cst_33 : f32 to vector<16x128xf32>
    %77 = arith.mulf %76, %62 : vector<16x128xf32>
    %78 = arith.addf %75, %77 : vector<16x128xf32>
    %c1_i32_34 = arith.constant 1 : i32
    %79 = tpu.dynamic_rotate %78 by %c1_i32_34 dim 0 : vector<16x128xf32>, i32 -> vector<16x128xf32>
    %cst_35 = arith.constant 0.000000e+00 : f32
    %80 = vector.broadcast %cst_35 : f32 to vector<16x128xf32>
    %81 = arith.select %3, %79, %80 : vector<16x128xi1>, vector<16x128xf32>
    %c15_i32_36 = arith.constant 15 : i32
    %82 = tpu.dynamic_rotate %78 by %c15_i32_36 dim 0 : vector<16x128xf32>, i32 -> vector<16x128xf32>
    %cst_37 = arith.constant 0.000000e+00 : f32
    %83 = vector.broadcast %cst_37 : f32 to vector<16x128xf32>
    %84 = arith.select %5, %82, %83 : vector<16x128xi1>, vector<16x128xf32>
    %85 = arith.addf %81, %84 : vector<16x128xf32>
    %cst_38 = arith.constant 0.274068624 : f32
    %86 = vector.broadcast %cst_38 : f32 to vector<16x128xf32>
    %87 = arith.mulf %86, %85 : vector<16x128xf32>
    %cst_39 = arith.constant 0.451862752 : f32
    %88 = vector.broadcast %cst_39 : f32 to vector<16x128xf32>
    %89 = arith.mulf %88, %78 : vector<16x128xf32>
    %90 = arith.addf %87, %89 : vector<16x128xf32>
    %c1_i32_40 = arith.constant 1 : i32
    %91 = tpu.dynamic_rotate %66 by %c1_i32_40 dim 1 : vector<16x128xf32>, i32 -> vector<16x128xf32>
    %cst_41 = arith.constant 0.000000e+00 : f32
    %92 = vector.broadcast %cst_41 : f32 to vector<16x128xf32>
    %93 = arith.select %7, %91, %92 : vector<16x128xi1>, vector<16x128xf32>
    %c127_i32_42 = arith.constant 127 : i32
    %94 = tpu.dynamic_rotate %66 by %c127_i32_42 dim 1 : vector<16x128xf32>, i32 -> vector<16x128xf32>
    %cst_43 = arith.constant 0.000000e+00 : f32
    %95 = vector.broadcast %cst_43 : f32 to vector<16x128xf32>
    %96 = arith.select %9, %94, %95 : vector<16x128xi1>, vector<16x128xf32>
    %97 = arith.addf %93, %96 : vector<16x128xf32>
    %cst_44 = arith.constant 0.274068624 : f32
    %98 = vector.broadcast %cst_44 : f32 to vector<16x128xf32>
    %99 = arith.mulf %98, %97 : vector<16x128xf32>
    %cst_45 = arith.constant 0.451862752 : f32
    %100 = vector.broadcast %cst_45 : f32 to vector<16x128xf32>
    %101 = arith.mulf %100, %66 : vector<16x128xf32>
    %102 = arith.addf %99, %101 : vector<16x128xf32>
    %c1_i32_46 = arith.constant 1 : i32
    %103 = tpu.dynamic_rotate %102 by %c1_i32_46 dim 0 : vector<16x128xf32>, i32 -> vector<16x128xf32>
    %cst_47 = arith.constant 0.000000e+00 : f32
    %104 = vector.broadcast %cst_47 : f32 to vector<16x128xf32>
    %105 = arith.select %3, %103, %104 : vector<16x128xi1>, vector<16x128xf32>
    %c15_i32_48 = arith.constant 15 : i32
    %106 = tpu.dynamic_rotate %102 by %c15_i32_48 dim 0 : vector<16x128xf32>, i32 -> vector<16x128xf32>
    %cst_49 = arith.constant 0.000000e+00 : f32
    %107 = vector.broadcast %cst_49 : f32 to vector<16x128xf32>
    %108 = arith.select %5, %106, %107 : vector<16x128xi1>, vector<16x128xf32>
    %109 = arith.addf %105, %108 : vector<16x128xf32>
    %cst_50 = arith.constant 0.274068624 : f32
    %110 = vector.broadcast %cst_50 : f32 to vector<16x128xf32>
    %111 = arith.mulf %110, %109 : vector<16x128xf32>
    %cst_51 = arith.constant 0.451862752 : f32
    %112 = vector.broadcast %cst_51 : f32 to vector<16x128xf32>
    %113 = arith.mulf %112, %102 : vector<16x128xf32>
    %114 = arith.addf %111, %113 : vector<16x128xf32>
    %115 = arith.mulf %62, %114 : vector<16x128xf32>
    %116 = arith.mulf %90, %66 : vector<16x128xf32>
    %117 = arith.addf %115, %116 : vector<16x128xf32>
    %cst_52 = arith.constant 1.125000e+00 : f32
    %118 = vector.broadcast %cst_52 : f32 to vector<16x128xf32>
    %119 = arith.mulf %118, %117 : vector<16x128xf32>
    %c1_i32_53 = arith.constant 1 : i32
    %120 = tpu.dynamic_rotate %117 by %c1_i32_53 dim 1 : vector<16x128xf32>, i32 -> vector<16x128xf32>
    %cst_54 = arith.constant 0.000000e+00 : f32
    %121 = vector.broadcast %cst_54 : f32 to vector<16x128xf32>
    %122 = arith.select %7, %120, %121 : vector<16x128xi1>, vector<16x128xf32>
    %123 = arith.addf %122, %117 : vector<16x128xf32>
    %c127_i32_55 = arith.constant 127 : i32
    %124 = tpu.dynamic_rotate %117 by %c127_i32_55 dim 1 : vector<16x128xf32>, i32 -> vector<16x128xf32>
    %cst_56 = arith.constant 0.000000e+00 : f32
    %125 = vector.broadcast %cst_56 : f32 to vector<16x128xf32>
    %126 = arith.select %9, %124, %125 : vector<16x128xi1>, vector<16x128xf32>
    %127 = arith.addf %123, %126 : vector<16x128xf32>
    %c1_i32_57 = arith.constant 1 : i32
    %128 = tpu.dynamic_rotate %127 by %c1_i32_57 dim 0 : vector<16x128xf32>, i32 -> vector<16x128xf32>
    %cst_58 = arith.constant 0.000000e+00 : f32
    %129 = vector.broadcast %cst_58 : f32 to vector<16x128xf32>
    %130 = arith.select %3, %128, %129 : vector<16x128xi1>, vector<16x128xf32>
    %131 = arith.addf %130, %127 : vector<16x128xf32>
    %c15_i32_59 = arith.constant 15 : i32
    %132 = tpu.dynamic_rotate %127 by %c15_i32_59 dim 0 : vector<16x128xf32>, i32 -> vector<16x128xf32>
    %cst_60 = arith.constant 0.000000e+00 : f32
    %133 = vector.broadcast %cst_60 : f32 to vector<16x128xf32>
    %134 = arith.select %5, %132, %133 : vector<16x128xi1>, vector<16x128xf32>
    %135 = arith.addf %131, %134 : vector<16x128xf32>
    %cst_61 = arith.constant 1.250000e-01 : f32
    %136 = vector.broadcast %cst_61 : f32 to vector<16x128xf32>
    %137 = arith.mulf %136, %135 : vector<16x128xf32>
    %138 = arith.subf %119, %137 : vector<16x128xf32>
    %cst_62 = arith.constant 0.000000e+00 : f32
    %139 = vector.broadcast %cst_62 : f32 to vector<16x128xf32>
    %140 = arith.maximumf %138, %139 : vector<16x128xf32>
    %c0_63 = arith.constant 0 : index
    %c0_64 = arith.constant 0 : index
    %c0_65 = arith.constant 0 : index
    %141 = vector.load %arg2[%c0_63, %c0_64, %c0_65] : memref<1x16x128xf32, #tpu.memory_space<vmem>>, vector<1x16x128xf32>
    %142 = vector.shape_cast %141 : vector<1x16x128xf32> to vector<16x128xf32>
    %143 = vector.shape_cast %140 : vector<16x128xf32> to vector<1x16x128xf32>
    tpu.vector_store %arg2[%c0_63, %c0_64, %c0_65], %143 {strides = array<i32>} : memref<1x16x128xf32, #tpu.memory_space<vmem>>, vector<1x16x128xf32>,
    return
  }
  func.func @transform_0(%arg0: i32) -> (i32, i32, i32) {
    %c0_i32 = arith.constant 0 : i32
    %c0_i32_0 = arith.constant 0 : i32
    %c0_i32_1 = arith.constant 0 : i32
    return %arg0, %c0_i32, %c0_i32_0 : i32, i32, i32
  }
  func.func @transform_1(%arg0: i32) -> (i32, i32, i32) {
    %c0_i32 = arith.constant 0 : i32
    %c0_i32_0 = arith.constant 0 : i32
    %c0_i32_1 = arith.constant 0 : i32
    return %arg0, %c0_i32, %c0_i32_0 : i32, i32, i32
  }
}

</mosaic_0001>

<bundles_post_ra>
// kernel: new_model_forward.1
= control target key start
LH: loop header
LB: loop body
LE: loop exit
PB: predicated region body
PF: predicated region fallthrough
CT: control target
= control target key end

     0   :  { %s446_s6 = smov 0   ;;  %s627_s0 = inlined_call_operand.vmem [shape: f32[2,16,128], index: 0, kind: input, shape index: {}]   ;;  %s628_s1 = inlined_call_operand.vmem [shape: f32[2,16,128], index: 1, kind: output, shape index: {}]  }
   0x1 LB: > { %s403_s7 = sadd.s32 4294967295, %s432_s6   ;;  %p407_p0 = scmp.ge.s32.totalorder %s432_s6, 1  ;;  %s432_s6 = sphi %s446_s6, %s11_s6  }
   0x2   : > { %p87_p1 = scmp.lt.s32.totalorder %s432_s6, 3 }
   0x4   : > { %p88_p2 = pnand %p407_p0, %p87_p1 }
   0x5   : > { %p107_p3 = scmp.lt.s32.totalorder (!%p88_p2), %s403_s7, 1  ;;  %s434_s12 = smov (!%p88_p2), 127   ;;  %v117_v2 = vlaneseq (!%p88_p2) }
   0x6   : > { %91 = sbr.rel (%p88_p2) target bundleno = 579 (0x243), region = 24  ;;  %s435_s13 = smov (!%p88_p2), 1  }
   0x7   : > { %v466_v3 = vand.u32 (!%p88_p2), 127, %v117_v2  ;;  %v474_v9 = vshrl.u32 (!%p88_p2), %v117_v2, 7 }
   0x9   : > { %vm127_vm0 = vcmp.lt.s32.totalorder (!%p88_p2), %v466_v3, 15  ;;  %vm126_vm1 = vcmp.gt.s32.totalorder (!%p88_p2), %v466_v3, 0  ;;  %v481_v18 = vadd.s32 (!%p88_p2), 8, %v474_v9  ;;  %vm122_vm2 = vcmp.gt.s32.totalorder (!%p88_p2), %v474_v9, 0 }
   0xa   : > { %vm152_vm3 = vcmp.lt.s32.totalorder (!%p88_p2), %v474_v9, 1  ;;  %vm159_vm4 = vcmp.lt.s32.totalorder (!%p88_p2), %v474_v9, 7 }
   0xb   : > { %vm125_vm5 = vcmp.lt.s32.totalorder (!%p88_p2), %v481_v18, 15 }
   0xd   : > { %s630_s7 = smov (!%p107_p3, %s403_s7), 1 }
   0xe   : > { %s414_s8 = sshll.u32 %s630_s7, 4 }
   0xf   : > { %s111_s11 = scalar_lea.vmem %s627_s0, %s414_s8  ;;  %s116_s16 = scalar_lea.vmem %s628_s1, %s414_s8 }
  0x10   : > { %v128_v0 = vld [vmem:[%s111_s11] sm:$0xff]  ;;  %v129_v1 = vld [vmem:[%s111_s11 + $0x8] sm:$0xff] }
  0x11   : > { %136 = vrot.lane.b32.xlu1 %v128_v0, %s434_s12  ;;  %130 = vrot.lane.b32.xlu0 %v128_v0, %s435_s13  ;;  %v146_v10 = vmul.f32 0.45186275, %v128_v0  ;;  %v147_v16 = vmul.f32 0.45186275, %v129_v1 }
  0x15   : > { %138 = vrot.lane.b32.xlu1 %v129_v1, %s434_s12  ;;  %132 = vrot.lane.b32.xlu0 %v129_v1, %s435_s13 }
  0x83   : > { %v137_v4 = vpop.permute.xlu1 %136  ;;  %v131_v5 = vpop.permute.xlu0 %130 }
  0x84   : > { %v140_v6 = vsel %vm127_vm0, %v137_v4, 0.0  ;;  %v134_v7 = vsel %vm126_vm1, %v131_v5, 0.0 }
  0x85   : > { %v142_v8 = vadd.f32 %v140_v6, %v134_v7 }
  0x87   : > { %v144_v11 = vmul.f32 0.27406862, %v142_v8  ;;  %v139_v12 = vpop.permute.xlu1 %138  ;;  %v133_v13 = vpop.permute.xlu0 %132 }
  0x88   : > { %v141_v14 = vsel %vm127_vm0, %v139_v12, 0.0  ;;  %v135_v15 = vsel %vm126_vm1, %v133_v13, 0.0 }
  0x89   : > { %v143_v17 = vadd.f32 %v141_v14, %v135_v15  ;;  %v148_v19 = vadd.f32 %v146_v10, %v144_v11 }
  0x8b   : > { %v145_v20 = vmul.f32 0.27406862, %v143_v17  ;;  %v150_v22 = vrot.slane %v148_v19, 7  ;;  %v157_v23 = vrot.slane %v148_v19, 1  ;;  %v168_v34 = vmul.f32 0.45186275, %v148_v19 }
  0x8d   : > { %v149_v21 = vadd.f32 %v147_v16, %v145_v20 }
  0x8f   : > { %v151_v24 = vrot.slane %v149_v21, 7  ;;  %v158_v25 = vrot.slane %v149_v21, 1  ;;  %v169_v35 = vmul.f32 0.45186275, %v149_v21 }
  0x91   : > { %v154_v26 = vsel %vm152_vm3, %v151_v24, %v150_v22  ;;  %v160_v27 = vsel %vm159_vm4, %v157_v23, %v158_v25  ;;  %v153_v28 = vsel %vm152_vm3, %v150_v22, %v151_v24  ;;  %v161_v29 = vsel %vm159_vm4, %v158_v25, %v157_v23 }
  0x92   : > { %v155_v30 = vsel %vm122_vm2, %v154_v26, 0.0  ;;  %v163_v31 = vsel %vm125_vm5, %v161_v29, 0.0 }
  0x93   : > { %v164_v32 = vadd.f32 %v160_v27, %v155_v30  ;;  %v165_v33 = vadd.f32 %v163_v31, %v153_v28 }
  0x95   : > { %v166_v36 = vmul.f32 0.27406862, %v164_v32  ;;  %v167_v37 = vmul.f32 0.27406862, %v165_v33 }
  0x97   : > { %v170_v38 = vadd.f32 %v168_v34, %v166_v36  ;;  %v171_v39 = vadd.f32 %v169_v35, %v167_v37 }
  0x99   : > { %172 = vrot.lane.b32.xlu0 %v170_v38, %s435_s13  ;;  %174 = vrot.lane.b32.xlu1 %v171_v39, %s435_s13  ;;  %v188_v50 = vmul.f32 0.45186275, %v170_v38  ;;  %v189_v53 = vmul.f32 0.45186275, %v171_v39 }
  0x9d   : > { %178 = vrot.lane.b32.xlu0 %v170_v38, %s434_s12  ;;  %180 = vrot.lane.b32.xlu1 %v171_v39, %s434_s12 }
 0x10b   : > { %v173_v40 = vpop.permute.xlu0 %172  ;;  %v175_v41 = vpop.permute.xlu1 %174 }
 0x10c   : > { %v176_v44 = vsel %vm126_vm1, %v173_v40, 0.0  ;;  %v177_v45 = vsel %vm126_vm1, %v175_v41, 0.0 }
 0x10f   : > { %v179_v42 = vpop.permute.xlu0 %178  ;;  %v181_v43 = vpop.permute.xlu1 %180 }
 0x110   : > { %v182_v46 = vsel %vm127_vm0, %v179_v42, 0.0  ;;  %v183_v47 = vsel %vm127_vm0, %v181_v43, 0.0 }
 0x111   : > { %v184_v48 = vadd.f32 %v182_v46, %v176_v44  ;;  %v185_v49 = vadd.f32 %v183_v47, %v177_v45 }
 0x113   : > { %v186_v51 = vmul.f32 0.27406862, %v184_v48  ;;  %v187_v52 = vmul.f32 0.27406862, %v185_v49 }
 0x115   : > { %v190_v54 = vadd.f32 %v188_v50, %v186_v51  ;;  %v191_v55 = vadd.f32 %v189_v53, %v187_v52 }
 0x117   : > { %v192_v56 = vrot.slane %v190_v54, 7  ;;  %v198_v57 = vrot.slane %v190_v54, 1  ;;  %v193_v58 = vrot.slane %v191_v55, 7  ;;  %v199_v59 = vrot.slane %v191_v55, 1 }
 0x118   : > { %v208_v5 = vmul.f32 0.45186275, %v190_v54  ;;  %v209_v8 = vmul.f32 0.45186275, %v191_v55 }
 0x119   : > { %v194_v60 = vsel %vm152_vm3, %v192_v56, %v193_v58  ;;  %v195_v61 = vsel %vm152_vm3, %v193_v58, %v192_v56  ;;  %v200_v63 = vsel %vm159_vm4, %v198_v57, %v199_v59  ;;  %v201_v0 = vsel %vm159_vm4, %v199_v59, %v198_v57 }
 0x11a   : > { %v196_v62 = vsel %vm122_vm2, %v195_v61, 0.0  ;;  %v203_v1 = vsel %vm125_vm5, %v201_v0, 0.0 }
 0x11b   : > { %v204_v2 = vadd.f32 %v200_v63, %v196_v62  ;;  %v205_v4 = vadd.f32 %v203_v1, %v194_v60 }
 0x11d   : > { %v206_v6 = vmul.f32 0.27406862, %v204_v2  ;;  %v207_v7 = vmul.f32 0.27406862, %v205_v4 }
 0x11f   : > { %v210_v10 = vadd.f32 %v208_v5, %v206_v6  ;;  %v211_v11 = vadd.f32 %v209_v8, %v207_v7 }
 0x121   : > { %v212_v12 = vsub.f32 %v170_v38, %v210_v10  ;;  %v213_v13 = vsub.f32 %v171_v39, %v211_v11 }
 0x123   : > { %v523_v14 = vmax.f32 %v212_v12, 0.0  ;;  %v525_v15 = vmax.f32 %v213_v13, 0.0  ;;  %v216_v16 = vsub.f32 0.0, %v212_v12  ;;  %v217_v17 = vsub.f32 0.0, %v213_v13 }
 0x125   : > { %220 = vrot.lane.b32.xlu0 %v523_v14, %s435_s13  ;;  %222 = vrot.lane.b32.xlu1 %v525_v15, %s435_s13  ;;  %v535_v19 = vmax.f32 %v216_v16, 0.0  ;;  %v537_v20 = vmax.f32 %v217_v17, 0.0  ;;  %v236_v32 = vmul.f32 0.45186275, %v523_v14  ;;  %v237_v35 = vmul.f32 0.45186275, %v525_v15 }
 0x127   : > { %v276_v48 = vmul.f32 0.45186275, %v535_v19  ;;  %v277_v60 = vmul.f32 0.45186275, %v537_v20 }
 0x129   : > { %226 = vrot.lane.b32.xlu0 %v523_v14, %s434_s12  ;;  %228 = vrot.lane.b32.xlu1 %v525_v15, %s434_s12 }
 0x12d   : > { %260 = vrot.lane.b32.xlu0 %v535_v19, %s435_s13  ;;  %262 = vrot.lane.b32.xlu1 %v537_v20, %s435_s13 }
 0x131   : > { %266 = vrot.lane.b32.xlu0 %v535_v19, %s434_s12  ;;  %268 = vrot.lane.b32.xlu1 %v537_v20, %s434_s12 }
 0x197   : > { %v221_v21 = vpop.permute.xlu0 %220  ;;  %v223_v22 = vpop.permute.xlu1 %222 }
 0x198   : > { %v224_v24 = vsel %vm126_vm1, %v221_v21, 0.0  ;;  %v225_v27 = vsel %vm126_vm1, %v223_v22, 0.0 }
 0x19b   : > { %v227_v23 = vpop.permute.xlu0 %226  ;;  %v229_v26 = vpop.permute.xlu1 %228 }
 0x19c   : > { %v230_v25 = vsel %vm127_vm0, %v227_v23, 0.0  ;;  %v231_v29 = vsel %vm127_vm0, %v229_v26, 0.0 }
 0x19d   : > { %v232_v28 = vadd.f32 %v230_v25, %v224_v24  ;;  %v233_v30 = vadd.f32 %v231_v29, %v225_v27 }
 0x19f   : > { %v234_v31 = vmul.f32 0.27406862, %v232_v28  ;;  %v261_v33 = vpop.permute.xlu0 %260  ;;  %v235_v34 = vmul.f32 0.27406862, %v233_v30  ;;  %v263_v36 = vpop.permute.xlu1 %262 }
 0x1a0   : > { %v264_v44 = vsel %vm126_vm1, %v261_v33, 0.0  ;;  %v265_v47 = vsel %vm126_vm1, %v263_v36, 0.0 }
 0x1a1   : > { %v238_v37 = vadd.f32 %v236_v32, %v234_v31  ;;  %v239_v38 = vadd.f32 %v237_v35, %v235_v34 }
 0x1a3   : > { %v240_v39 = vrot.slane %v238_v37, 7  ;;  %v246_v40 = vrot.slane %v238_v37, 1  ;;  %v267_v41 = vpop.permute.xlu0 %266  ;;  %v241_v42 = vrot.slane %v239_v38, 7  ;;  %v247_v43 = vrot.slane %v239_v38, 1  ;;  %v269_v46 = vpop.permute.xlu1 %268 }
 0x1a4   : > { %v270_v45 = vsel %vm127_vm0, %v267_v41, 0.0  ;;  %v271_v50 = vsel %vm127_vm0, %v269_v46, 0.0  ;;  %v257_v13 = vmul.f32 0.45186275, %v239_v38  ;;  %v256_v21 = vmul.f32 0.45186275, %v238_v37 }
 0x1a5   : > { %v272_v49 = vadd.f32 %v270_v45, %v264_v44  ;;  %v242_v51 = vsel %vm152_vm3, %v240_v39, %v241_v42  ;;  %v243_v52 = vsel %vm152_vm3, %v241_v42, %v240_v39  ;;  %v248_v53 = vsel %vm159_vm4, %v246_v40, %v247_v43 }
 0x1a6   : > { %v249_v54 = vsel %vm159_vm4, %v247_v43, %v246_v40  ;;  %v244_v55 = vsel %vm122_vm2, %v243_v52, 0.0  ;;  %v273_v58 = vadd.f32 %v271_v50, %v265_v47 }
 0x1a7   : > { %v251_v56 = vsel %vm125_vm5, %v249_v54, 0.0  ;;  %v274_v57 = vmul.f32 0.27406862, %v272_v49  ;;  %v252_v63 = vadd.f32 %v248_v53, %v244_v55 }
 0x1a8   : > { %v275_v61 = vmul.f32 0.27406862, %v273_v58  ;;  %v253_v62 = vadd.f32 %v251_v56, %v242_v51 }
 0x1a9   : > { %v278_v59 = vadd.f32 %v276_v48, %v274_v57  ;;  %v254_v7 = vmul.f32 0.27406862, %v252_v63 }
 0x1aa   : > { %v279_v2 = vadd.f32 %v277_v60, %v275_v61  ;;  %v255_v6 = vmul.f32 0.27406862, %v253_v62 }
 0x1ab   : > { %v280_v0 = vrot.slane %v278_v59, 7  ;;  %v286_v1 = vrot.slane %v278_v59, 1  ;;  %v296_v25 = vmul.f32 0.45186275, %v278_v59  ;;  %v258_v28 = vadd.f32 %v256_v21, %v254_v7 }
 0x1ac   : > { %v281_v4 = vrot.slane %v279_v2, 7  ;;  %v287_v5 = vrot.slane %v279_v2, 1  ;;  %v259_v24 = vadd.f32 %v257_v13, %v255_v6  ;;  %v297_v27 = vmul.f32 0.45186275, %v279_v2 }
 0x1ad   : > { %v302_v33 = vmul.f32 %v258_v28, %v535_v19 }
 0x1ae   : > { %v282_v8 = vsel %vm152_vm3, %v280_v0, %v281_v4  ;;  %v283_v10 = vsel %vm152_vm3, %v281_v4, %v280_v0  ;;  %v288_v11 = vsel %vm159_vm4, %v286_v1, %v287_v5  ;;  %v289_v12 = vsel %vm159_vm4, %v287_v5, %v286_v1 }
 0x1af   : > { %v284_v16 = vsel %vm122_vm2, %v283_v10, 0.0  ;;  %v291_v17 = vsel %vm125_vm5, %v289_v12, 0.0  ;;  %v303_v35 = vmul.f32 %v259_v24, %v537_v20 }
 0x1b0   : > { %v293_v22 = vadd.f32 %v291_v17, %v282_v8  ;;  %v292_v23 = vadd.f32 %v288_v11, %v284_v16 }
 0x1b2   : > { %v295_v26 = vmul.f32 0.27406862, %v293_v22  ;;  %v294_v29 = vmul.f32 0.27406862, %v292_v23 }
 0x1b4   : > { %v299_v30 = vadd.f32 %v297_v27, %v295_v26  ;;  %v298_v31 = vadd.f32 %v296_v25, %v294_v29 }
 0x1b6   : > { %v300_v32 = vmul.f32 %v298_v31, %v523_v14  ;;  %v301_v34 = vmul.f32 %v299_v30, %v525_v15 }
 0x1b8   : > { %v304_v36 = vadd.f32 %v302_v33, %v300_v32  ;;  %v305_v37 = vadd.f32 %v303_v35, %v301_v34 }
 0x1ba   : > { %308 = vrot.lane.b32.xlu0 %v304_v36, %s435_s13  ;;  %310 = vrot.lane.b32.xlu1 %v305_v37, %s435_s13  ;;  %v307_v59 = vmul.f32 1.125, %v305_v37  ;;  %v306_v61 = vmul.f32 1.125, %v304_v36 }
 0x1be   : > { %316 = vrot.lane.b32.xlu0 %v304_v36, %s434_s12  ;;  %318 = vrot.lane.b32.xlu1 %v305_v37, %s434_s12 }
 0x22c   : > { %v309_v38 = vpop.permute.xlu0 %308  ;;  %v311_v39 = vpop.permute.xlu1 %310 }
 0x22d   : > { %v312_v14 = vsel %vm126_vm1, %v309_v38, 0.0  ;;  %v313_v15 = vsel %vm126_vm1, %v311_v39, 0.0 }
 0x22e   : > { %v314_v19 = vadd.f32 %v312_v14, %v304_v36  ;;  %v315_v20 = vadd.f32 %v313_v15, %v305_v37 }
 0x230   : > { %v317_v40 = vpop.permute.xlu0 %316  ;;  %v319_v41 = vpop.permute.xlu1 %318 }
 0x231   : > { %v320_v42 = vsel %vm127_vm0, %v317_v40, 0.0  ;;  %v321_v43 = vsel %vm127_vm0, %v319_v41, 0.0 }
 0x232   : > { %v322_v44 = vadd.f32 %v320_v42, %v314_v19  ;;  %v323_v45 = vadd.f32 %v321_v43, %v315_v20 }
 0x234   : > { %v324_v46 = vrot.slane %v322_v44, 7  ;;  %v332_v47 = vrot.slane %v322_v44, 1  ;;  %v325_v48 = vrot.slane %v323_v45, 7  ;;  %v333_v49 = vrot.slane %v323_v45, 1 }
 0x236   : > { %v326_v50 = vsel %vm152_vm3, %v324_v46, %v325_v48  ;;  %v327_v51 = vsel %vm152_vm3, %v325_v48, %v324_v46  ;;  %v335_v52 = vsel %vm159_vm4, %v333_v49, %v332_v47  ;;  %v334_v56 = vsel %vm159_vm4, %v332_v47, %v333_v49 }
 0x237   : > { %v328_v3 = vsel %vm122_vm2, %v327_v51, 0.0  ;;  %v331_v53 = vadd.f32 %v326_v50, %v323_v45  ;;  %v337_v54 = vsel %vm125_vm5, %v335_v52, 0.0 }
 0x238   : > { %v330_v55 = vadd.f32 %v328_v3, %v322_v44 }
 0x239   : > { %v339_v57 = vadd.f32 %v337_v54, %v331_v53 }
 0x23a   : > { %v338_v58 = vadd.f32 %v334_v56, %v330_v55 }
 0x23b   : > { %v341_v60 = vmul.f32 0.125, %v339_v57 }
 0x23c   : > { %v340_v62 = vmul.f32 0.125, %v338_v58 }
 0x23d   : > { %v343_v63 = vsub.f32 %v307_v59, %v341_v60 }
 0x23e   : > { %v342_v0 = vsub.f32 %v306_v61, %v340_v62 }
 0x23f   : > { %v345_v1 = vmax.f32 %v343_v63, 0.0 }
 0x240   : > { %v344_v18 = vmax.f32 %v342_v0, 0.0 }
 0x241   : > { %347 = vst [vmem:[%s116_s16 + $0x8] sm:$0xff] %v345_v1 }
 0x242   : > { %346 = vst [vmem:[%s116_s16] sm:$0xff] %v344_v18 }
 0x243 PF: > { %s11_s6 = sadd.s32 1, %s432_s6  }
 0x244   : > { %p8_p4 = scmp.ge.s32.totalorder %s11_s6, 4  }
 0x246   :  { %10 = sbr.rel (!%p8_p4) target bundleno = 1 (0x1), region = 54 }

</bundles_post_ra>
